<compile_context>
chip_gen: v7x
topology: tpu7x:2x2x1
jax: 0.10.0
libtpu: 0.0.40
codegen_flags: <defaults>
</compile_context>

<pallas_src>
import functools
import math

import jax
import jax.numpy as jnp
import numpy as np
from jax.experimental import pallas as pl
from jax.experimental.pallas import tpu as pltpu


# ------------------------- tiling helper -------------------------

def _pick_tile(dim, target, align):
    """Largest multiple of `align` that divides `dim` and is <= target; full dim if small."""
    if dim <= target:
        return dim
    t = (target // align) * align
    while t >= align:
        if dim % t == 0:
            return t
        t -= align
    # TODO(synk): pad + cdiv grid for ragged dims instead of one giant block.
    return dim


# ------------------------- tiled linear: y = x @ W + b -------------------------
# W is pre-transposed to (K, N) and pre-cast to bf16 at parameter-setup time.

def linear_kernel(x_ref, w_ref, b_ref, o_ref, acc_ref):
    # x: (tm, tk) bf16, w: (tk, tn) bf16, b: (1, tn) f32, o: (tm, tn), acc f32 scratch.
    @pl.when(pl.program_id(2) == 0)
    def _zero():
        acc_ref[...] = jnp.zeros_like(acc_ref)

    acc_ref[...] += jnp.dot(x_ref[...], w_ref[...],
                            preferred_element_type=jnp.float32)

    @pl.when(pl.program_id(2) == pl.num_programs(2) - 1)
    def _store():
        o_ref[...] = (acc_ref[...] + b_ref[...]).astype(o_ref.dtype)


def linear(x2d, w_t, b, *, out_dtype=jnp.bfloat16, tm=512, tn=512, tk=512):
    """x2d: (M, K); w_t: (K, N) bf16 (pre-transposed); b: (N,) f32."""
    M, K = x2d.shape
    N = w_t.shape[1]
    tm = _pick_tile(M, tm, 16)
    tn = _pick_tile(N, tn, 128)
    tk = _pick_tile(K, tk, 128)
    grid = (M // tm, N // tn, K // tk)

    cost = pl.CostEstimate(
        flops=2 * M * N * K,
        transcendentals=0,
        bytes_accessed=M * K * 2 + K * N * 2 + N * 4
                       + M * N * jnp.dtype(out_dtype).itemsize)

    return pl.pallas_call(
        linear_kernel,
        out_shape=jax.ShapeDtypeStruct((M, N), out_dtype),
        grid_spec=pltpu.PrefetchScalarGridSpec(
            num_scalar_prefetch=0,
            grid=grid,
            in_specs=[
                pl.BlockSpec((tm, tk), lambda i, j, k: (i, k)),
                pl.BlockSpec((tk, tn), lambda i, j, k: (k, j)),
                pl.BlockSpec((1, tn), lambda i, j, k: (0, j)),
            ],
            out_specs=pl.BlockSpec((tm, tn), lambda i, j, k: (i, j)),
            scratch_shapes=[pltpu.VMEM((tm, tn), jnp.float32)],
        ),
        compiler_params=pltpu.CompilerParams(
            dimension_semantics=("parallel", "parallel", "arbitrary"),
            vmem_limit_bytes=32 * 1024 * 1024),
        cost_estimate=cost,
    )(x2d.astype(jnp.bfloat16), w_t, b.reshape(1, N).astype(jnp.float32))


# ------------------------- flash attention (RoPE + online softmax), heads-batched -------------------------

def flash_attn_kernel(qkv_q_ref, qkv_kv_ref, sin_q_ref, cos_q_ref,
                      sin_k_ref, cos_k_ref, o_ref,
                      m_sc, l_sc, acc_sc, *, num_heads, d_k, hidden, scale):
    ki = pl.program_id(2)

    @pl.when(ki == 0)
    def _init():
        m_sc[...] = jnp.full_like(m_sc, -jnp.inf)
        l_sc[...] = jnp.zeros_like(l_sc)
        acc_sc[...] = jnp.zeros_like(acc_sc)

    tq = qkv_q_ref.shape[1]
    tkv = qkv_kv_ref.shape[1]
    half = d_k // 2

    def to_heads(x, s):
        # (s, H) -> (num_heads, s, d_k): one batched relayout instead of per-head slices.
        return x.reshape(s, num_heads, d_k).transpose(1, 0, 2)

    def rope(x, sin, cos):
        # x: (nh, s, d) f32; sin/cos: (s, d) f32.  x*cos + rotate_half(x)*sin.
        x1, x2 = x[..., :half], x[..., half:]
        rot = jnp.concatenate([-x2, x1], axis=-1)
        return x * cos[None] + rot * sin[None]

    qq = qkv_q_ref[0]                                        # (tq, 3H) bf16
    kv = qkv_kv_ref[0]                                       # (tkv, 3H) bf16
    q = to_heads(qq[:, :hidden].astype(jnp.float32), tq)
    k = to_heads(kv[:, hidden:2 * hidden].astype(jnp.float32), tkv)
    v = to_heads(kv[:, 2 * hidden:], tkv)                    # stays bf16 for PV matmul

    qr = rope(q, sin_q_ref[...], cos_q_ref[...]).astype(jnp.bfloat16)
    kr = rope(k, sin_k_ref[...], cos_k_ref[...]).astype(jnp.bfloat16)

    s = jnp.einsum('hqd,hkd->hqk', qr, kr,
                   preferred_element_type=jnp.float32) * scale     # (nh, tq, tkv) f32

    m_prev = m_sc[...]
    m_new = jnp.maximum(m_prev, jnp.max(s, axis=-1, keepdims=True))
    alpha = jnp.exp(m_prev - m_new)
    # TODO(synk): bf16 exp on EUP here for v6e/v7x (v5e EUP lacks bf16).
    p = jnp.exp(s - m_new)
    l_sc[...] = alpha * l_sc[...] + jnp.sum(p, axis=-1, keepdims=True)
    acc_sc[...] = alpha * acc_sc[...] + jnp.einsum(
        'hqk,hkd->hqd', p.astype(jnp.bfloat16), v, preferred_element_type=jnp.float32)
    m_sc[...] = m_new

    @pl.when(ki == pl.num_programs(2) - 1)
    def _finalize():
        o = acc_sc[...] * pl.reciprocal(l_sc[...], approx=True)    # (nh, tq, d) f32
        # back to (tq, H): single lane-dense store of the whole head-merged slab.
        o_ref[0] = o.transpose(1, 0, 2).reshape(tq, hidden).astype(o_ref.dtype)


def attention(qkv, sin, cos, num_heads, *, tq=256, tkv=512, out_dtype=jnp.bfloat16):
    """qkv: (B, S, 3H) bf16 fused [q|k|v] activations; sin/cos: (S, d_k) f32."""
    B, S, H3 = qkv.shape
    H = H3 // 3
    d = H // num_heads
    scale = 1.0 / math.sqrt(d)
    tq = _pick_tile(S, tq, 8)
    tkv = _pick_tile(S, tkv, 8)

    kernel = functools.partial(flash_attn_kernel, num_heads=num_heads, d_k=d,
                               hidden=H, scale=scale)

    cost = pl.CostEstimate(
        flops=4 * B * num_heads * S * S * d + 20 * B * S * H,
        transcendentals=B * num_heads * S * S,
        bytes_accessed=2 * B * S * H3 * 2 + 4 * S * d * 4 + B * S * H * 2)

    # Note: qkv is passed twice (q-role and kv-role BlockSpecs); the q-side block is only
    # re-fetched when (b, qi) changes, so the duplicated columns are a bounded overhead.
    return pl.pallas_call(
        kernel,
        out_shape=jax.ShapeDtypeStruct((B, S, H), out_dtype),
        grid_spec=pltpu.PrefetchScalarGridSpec(
            num_scalar_prefetch=0,
            grid=(B, S // tq, S // tkv),
            in_specs=[
                pl.BlockSpec((1, tq, H3), lambda b, qi, ki: (b, qi, 0)),   # q rows
                pl.BlockSpec((1, tkv, H3), lambda b, qi, ki: (b, ki, 0)),  # kv rows
                pl.BlockSpec((tq, d), lambda b, qi, ki: (qi, 0)),          # sin (q rows)
                pl.BlockSpec((tq, d), lambda b, qi, ki: (qi, 0)),          # cos (q rows)
                pl.BlockSpec((tkv, d), lambda b, qi, ki: (ki, 0)),         # sin (k rows)
                pl.BlockSpec((tkv, d), lambda b, qi, ki: (ki, 0)),         # cos (k rows)
            ],
            out_specs=pl.BlockSpec((1, tq, H), lambda b, qi, ki: (b, qi, 0)),
            scratch_shapes=[
                pltpu.VMEM((num_heads, tq, 1), jnp.float32),   # m (running max)
                pltpu.VMEM((num_heads, tq, 1), jnp.float32),   # l (running denom)
                pltpu.VMEM((num_heads, tq, d), jnp.float32),   # acc
            ],
        ),
        compiler_params=pltpu.CompilerParams(
            dimension_semantics=("parallel", "parallel", "arbitrary"),
            vmem_limit_bytes=32 * 1024 * 1024),
        cost_estimate=cost,
    )(qkv, qkv, sin, cos, sin, cos)


# ------------------------- one-time parameter preprocessing -------------------------

def prepare_params(p):
    """Fuse / cast / transpose weights ONCE at init (not per forward)."""
    wq, wk, wv, wo = p["wq"], p["wk"], p["wv"], p["wo"]
    return {
        "w_qkv_t": jnp.concatenate([wq, wk, wv], axis=0).T.astype(jnp.bfloat16),  # (H, 3H)
        "b_qkv": jnp.concatenate([p["bq"], p["bk"], p["bv"]]),                    # (3H,)
        "wq_t": wq.T.astype(jnp.bfloat16), "bq": p["bq"],
        "wk_t": wk.T.astype(jnp.bfloat16), "bk": p["bk"],
        "wv_t": wv.T.astype(jnp.bfloat16), "bv": p["bv"],
        "wo_t": wo.T.astype(jnp.bfloat16), "bo": p["bo"],
    }


# ------------------------- module forward (glue in plain JAX) -------------------------

def rope_tables(seq_len, d):
    # Matches the module: inv_freq over the FULL head dim (not d//2).
    inv_freq = 1.0 / (10000.0 ** (jnp.arange(d, dtype=jnp.float32) / d))
    t = jnp.arange(seq_len, dtype=jnp.float32)
    freqs = t[:, None] * inv_freq[None, :]
    return jnp.sin(freqs), jnp.cos(freqs)


def multi_headed_attention(query, key, value, prepared, num_heads):
    B, S, H = query.shape
    d = H // num_heads

    if (query is key) and (key is value):
        # Self-attention (canonical BERT path): one fused QKV projection, bf16 out.
        qkv = linear(query.reshape(B * S, H), prepared["w_qkv_t"], prepared["b_qkv"])
    else:
        # Cross-attention: separate tiled projections (same kernel), fused layout after.
        # TODO(synk): split q/kv kernel inputs so encoder/decoder seq lengths may differ.
        assert key.shape[1] == S and value.shape[1] == S
        q = linear(query.reshape(B * S, H), prepared["wq_t"], prepared["bq"])
        k = linear(key.reshape(B * S, H), prepared["wk_t"], prepared["bk"])
        v = linear(value.reshape(B * S, H), prepared["wv_t"], prepared["bv"])
        qkv = jnp.concatenate([q, k, v], axis=-1)

    qkv = qkv.reshape(B, S, 3 * H)
    sin, cos = rope_tables(S, d)
    o = attention(qkv, sin, cos, num_heads)                                       # (B,S,H) bf16
    out = linear(o.reshape(B * S, H), prepared["wo_t"], prepared["bo"],
                 out_dtype=jnp.float32)
    return out.reshape(B, S, H)


# ------------------------- pure-JAX reference (for correctness check) -------------------------

def reference(query, key, value, params, num_heads):
    B, S, H = query.shape
    d = H // num_heads
    hp = jax.lax.Precision.HIGHEST

    def lin(x, w, b):
        return jnp.dot(x, w.T, precision=hp) + b

    q = lin(query, params["wq"], params["bq"]).reshape(B, S, num_heads, d).transpose(0, 2, 1, 3)
    k = lin(key, params["wk"], params["bk"]).reshape(B, S, num_heads, d).transpose(0, 2, 1, 3)
    v = lin(value, params["wv"], params["bv"]).reshape(B, S, num_heads, d).transpose(0, 2, 1, 3)

    sin, cos = rope_tables(S, d)
    sin = sin[None, None]
    cos = cos[None, None]

    def rot_half(x):
        x1, x2 = jnp.split(x, 2, axis=-1)
        return jnp.concatenate([-x2, x1], axis=-1)

    q = q * cos + rot_half(q) * sin
    k = k * cos + rot_half(k) * sin

    s = jnp.einsum("bhqd,bhkd->bhqk", q, k, precision=hp) / math.sqrt(d)
    p = jax.nn.softmax(s, axis=-1)
    o = jnp.einsum("bhqk,bhkd->bhqd", p, v, precision=hp)
    o = o.transpose(0, 2, 1, 3).reshape(B, S, H)
    return lin(o, params["wo"], params["bo"])


# ------------------------- main -------------------------

if __name__ == "__main__":
    B, S, H, NH = 2, 8, 32, 4   # batch, seq, hidden, num_heads  (d_k = 8)

    key0 = jax.random.PRNGKey(0)
    keys = jax.random.split(key0, 12)

    def w_init(k):
        return jax.random.normal(k, (H, H), jnp.float32) * 0.02

    def b_init(k):
        return jax.random.normal(k, (H,), jnp.float32) * 0.02

    raw_params = {
        "wq": w_init(keys[0]), "bq": b_init(keys[1]),
        "wk": w_init(keys[2]), "bk": b_init(keys[3]),
        "wv": w_init(keys[4]), "bv": b_init(keys[5]),
        "wo": w_init(keys[6]), "bo": b_init(keys[7]),
    }
    prepared = prepare_params(raw_params)   # one-time fuse/cast/transpose

    # Self-attention path (fused QKV projection).
    x = jax.random.normal(keys[8], (B, S, H), jnp.float32)
    out = jax.block_until_ready(multi_headed_attention(x, x, x, prepared, NH))
    ref = jax.block_until_ready(reference(x, x, x, raw_params, NH))
    np.testing.assert_allclose(np.asarray(out), np.asarray(ref), rtol=2e-2, atol=5e-3)

    # Cross-attention path (separate projections).
    q_in = jax.random.normal(keys[9], (B, S, H), jnp.float32)
    k_in = jax.random.normal(keys[10], (B, S, H), jnp.float32)
    v_in = jax.random.normal(keys[11], (B, S, H), jnp.float32)
    out2 = jax.block_until_ready(multi_headed_attention(q_in, k_in, v_in, prepared, NH))
    ref2 = jax.block_until_ready(reference(q_in, k_in, v_in, raw_params, NH))
    np.testing.assert_allclose(np.asarray(out2), np.asarray(ref2), rtol=2e-2, atol=5e-3)

    print("KERNEL_OK")
</pallas_src>

<mosaic_0001>
module attributes {stable_mosaic.version = 11 : i64} {
  func.func @linear_kernel(%arg0: i32, %arg1: i32, %arg2: i32, %arg3: memref<16x32xbf16, #tpu.memory_space<vmem>>, %arg4: memref<32x96xbf16, #tpu.memory_space<vmem>>, %arg5: memref<1x96xf32, #tpu.memory_space<vmem>>, %arg6: memref<16x96xbf16, #tpu.memory_space<vmem>>, %arg7: memref<16x96xf32, #tpu.memory_space<vmem>>) attributes {dimension_semantics = [#tpu.dimension_semantics<parallel>, #tpu.dimension_semantics<parallel>, #tpu.dimension_semantics<arbitrary>], iteration_bounds = array<i64: 1, 1, 1>, scalar_prefetch = 0 : i64, scratch_operands = 1 : i64, tpu.core_type = #tpu.core_type<tc>, window_params = [{transform_indices = @transform_0, window_bounds = array<i64: 16, 32>}, {transform_indices = @transform_1, window_bounds = array<i64: 32, 96>}, {transform_indices = @transform_2, window_bounds = array<i64: 1, 96>}, {transform_indices = @transform_3, window_bounds = array<i64: 16, 96>}]} {
    %c0_i32 = arith.constant 0 : i32
    %0 = arith.cmpi eq, %arg2, %c0_i32 : i32
    %1 = arith.extui %0 : i1 to i32
    %c0_i32_0 = arith.constant 0 : i32
    %2 = arith.cmpi ne, %1, %c0_i32_0 : i32
    scf.if %2 {
      %cst_10 = arith.constant 0.000000e+00 : f32
      %12 = vector.broadcast %cst_10 : f32 to vector<16x96xf32>
      %c0_11 = arith.constant 0 : index
      %c0_12 = arith.constant 0 : index
      %13 = vector.load %arg7[%c0_11, %c0_12] : memref<16x96xf32, #tpu.memory_space<vmem>>, vector<16x96xf32>
      tpu.vector_store %arg7[%c0_11, %c0_12], %12 {strides = array<i32>} : memref<16x96xf32, #tpu.memory_space<vmem>>, vector<16x96xf32>,
    } else {
    }
    %c0 = arith.constant 0 : index
    %c0_1 = arith.constant 0 : index
    %3 = vector.load %arg7[%c0, %c0_1] : memref<16x96xf32, #tpu.memory_space<vmem>>, vector<16x96xf32>
    %c0_2 = arith.constant 0 : index
    %c0_3 = arith.constant 0 : index
    %4 = vector.load %arg3[%c0_2, %c0_3] : memref<16x32xbf16, #tpu.memory_space<vmem>>, vector<16x32xbf16>
    %c0_4 = arith.constant 0 : index
    %c0_5 = arith.constant 0 : index
    %5 = vector.load %arg4[%c0_4, %c0_5] : memref<32x96xbf16, #tpu.memory_space<vmem>>, vector<32x96xbf16>
    %cst = arith.constant dense<0.000000e+00> : vector<16x96xf32>
    %6 = tpu.matmul %4, %5, %cst {dimension_numbers = #tpu.dot_dimension_numbers<[1], [0], [0], [1], [0, 0, 1, 1], [], []>} : vector<16x32xbf16>, vector<32x96xbf16>, vector<16x96xf32> -> vector<16x96xf32>
    %7 = arith.addf %3, %6 : vector<16x96xf32>
    %c0_6 = arith.constant 0 : index
    %c0_7 = arith.constant 0 : index
    %8 = vector.load %arg7[%c0_6, %c0_7] : memref<16x96xf32, #tpu.memory_space<vmem>>, vector<16x96xf32>
    tpu.vector_store %arg7[%c0_6, %c0_7], %7 {strides = array<i32>} : memref<16x96xf32, #tpu.memory_space<vmem>>, vector<16x96xf32>,
    %c0_i32_8 = arith.constant 0 : i32
    %9 = arith.cmpi eq, %arg2, %c0_i32_8 : i32
    %10 = arith.extui %9 : i1 to i32
    %c0_i32_9 = arith.constant 0 : i32
    %11 = arith.cmpi ne, %10, %c0_i32_9 : i32
    scf.if %11 {
      %c0_10 = arith.constant 0 : index
      %c0_11 = arith.constant 0 : index
      %12 = vector.load %arg7[%c0_10, %c0_11] : memref<16x96xf32, #tpu.memory_space<vmem>>, vector<16x96xf32>
      %c0_12 = arith.constant 0 : index
      %c0_13 = arith.constant 0 : index
      %13 = vector.load %arg5[%c0_12, %c0_13] : memref<1x96xf32, #tpu.memory_space<vmem>>, vector<1x96xf32>
      %14 = vector.broadcast %13 : vector<1x96xf32> to vector<16x96xf32>
      %15 = arith.addf %12, %14 : vector<16x96xf32>
      %16 = arith.truncf %15 : vector<16x96xf32> to vector<16x96xbf16>
      %c0_14 = arith.constant 0 : index
      %c0_15 = arith.constant 0 : index
      %17 = vector.load %arg6[%c0_14, %c0_15] : memref<16x96xbf16, #tpu.memory_space<vmem>>, vector<16x96xbf16>
      tpu.vector_store %arg6[%c0_14, %c0_15], %16 {strides = array<i32>} : memref<16x96xbf16, #tpu.memory_space<vmem>>, vector<16x96xbf16>,
    } else {
    }
    return
  }
  func.func @transform_0(%arg0: i32, %arg1: i32, %arg2: i32) -> (i32, i32) {
    %c0_i32 = arith.constant 0 : i32
    return %arg0, %arg2 : i32, i32
  }
  func.func @transform_1(%arg0: i32, %arg1: i32, %arg2: i32) -> (i32, i32) {
    %c0_i32 = arith.constant 0 : i32
    return %arg2, %arg1 : i32, i32
  }
  func.func @transform_2(%arg0: i32, %arg1: i32, %arg2: i32) -> (i32, i32) {
    %c0_i32 = arith.constant 0 : i32
    %c0_i32_0 = arith.constant 0 : i32
    return %c0_i32, %arg1 : i32, i32
  }
  func.func @transform_3(%arg0: i32, %arg1: i32, %arg2: i32) -> (i32, i32) {
    %c0_i32 = arith.constant 0 : i32
    return %arg0, %arg1 : i32, i32
  }
}

</mosaic_0001>

<bundles_post_ra>
// kernel: tpu_custom_call.1
= control target key start
LH: loop header
LB: loop body
LE: loop exit
PB: predicated region body
PF: predicated region fallthrough
CT: control target
= control target key end

     0   :  { %8 = vsyncpa [#allocation4], 0  ;;  %s350_s0 = inlined_call_operand.hbm [shape: bf16[16,32], index: 0, kind: input, shape index: {}]   ;;  %s351_s1 = inlined_call_operand.hbm [shape: bf16[32,96], index: 1, kind: input, shape index: {}]   ;;  %s352_s2 = inlined_call_operand.vmem [shape: f32[1,96], index: 2, kind: input, shape index: {}]   ;;  %s353_s3 = inlined_call_operand.hbm [shape: bf16[16,96], index: 3, kind: output, shape index: {}]  }
   0x1   :  { %9 = vsyncpa [#allocation7], 0 }
   0x2   :  { %10 = vsyncpa [#allocation5], 0  ;;  %s271_s12 = smov [#allocation3]   ;;  %s199_s16 = scalar_lea.hbm %s350_s0, 128 }
   0x3   :  { %s16_s13 = sshll.u32 %s271_s12, 4  ;;  %p200_p0 = scmp.ne.s32.totalorder %s350_s0, %s199_s16  ;;  %s17_s13 = int_to_ptr.vmem [resolvable:$true] %s16_s13 }
   0x4   :  { %p203_p1 = scmp.lt.u32.totalorder %s199_s16, %s350_s0 }
   0x6   :  { %p205_p2 = pnand %p203_p1, %p200_p0 }
   0x8   :  { %208 = shalt.err (!%p205_p2)
}
   0x9   :  { %s209_s21 = scalar_lea.vmem %s17_s13, 128  ;;  %p214_p4 = scmp.lt.s32.totalorder %s17_s13, %s17_s13 }
   0xa   :  { %p210_p3 = scmp.ne.s32.totalorder %s17_s13, %s209_s21  ;;  %p215_p5 = scmp.lt.s32.totalorder %s209_s21, %s209_s21 }
   0xc   :  { %p216_p6 = por %p215_p5, %p214_p4 }
   0xe   :  { %p217_p7 = pnand %p216_p6, %p210_p3 }
  0x10   :  { %220 = shalt.err (!%p217_p7)
}
  0x11   :  { %s272_s22 = smov 64   ;;  %s273_s23 = smov 4  }
  0x12   :  { %22 = dma.hbm_to_vmem [thread:$0]  %s350_s0, 128, %s17_s13, [#allocation4], %s272_s22, %s272_s22, %s273_s23  }
  0x13   :  { %s274_s26 = smov [#allocation6]   ;;  %s221_s30 = scalar_lea.hbm %s351_s1, 256 }
  0x14   :  { %s28_s27 = sshll.u32 %s274_s26, 4  ;;  %p222_p8 = scmp.ne.s32.totalorder %s351_s1, %s221_s30  ;;  %s29_s27 = int_to_ptr.vmem [resolvable:$true] %s28_s27 }
  0x15   :  { %p225_p9 = scmp.lt.u32.totalorder %s221_s30, %s351_s1 }
  0x17   :  { %p227_p10 = pnand %p225_p9, %p222_p8 }
  0x19   :  { %230 = shalt.err (!%p227_p10)
}
  0x1a   :  { %s231_s8 = scalar_lea.vmem %s29_s27, 256  ;;  %p236_p12 = scmp.lt.s32.totalorder %s29_s27, %s29_s27 }
  0x1b   :  { %p232_p11 = scmp.ne.s32.totalorder %s29_s27, %s231_s8  ;;  %p237_p13 = scmp.lt.s32.totalorder %s231_s8, %s231_s8 }
  0x1d   :  { %p238_p0 = por %p237_p13, %p236_p12 }
  0x1f   :  { %p239_p1 = pnand %p238_p0, %p232_p11 }
  0x21   :  { %242 = shalt.err (!%p239_p1)
}
  0x22   :  { %34 = dma.hbm_to_vmem [thread:$0]  %s351_s1, 256, %s29_s27, [#allocation7], %s272_s22, %s272_s22, %s273_s23  }
  0x23   :  { %265 = dma.done.wait [#allocation4], 128  }
  0x24   :  { %266 = vsyncadd [#allocation4], 4294967168 }
  0x25   :  { %267 = dma.done.wait [#allocation7], 256  }
  0x26   :  { %268 = vsyncadd [#allocation7], 4294967040  ;;  %vm48_vm0 = vcmask 785408   ;;  %v275_v0 = vmov 0.0   ;;  %vm276_vm1 = vmmov 0   ;;  %v196_v1 = vld [vmem:[#allocation6] sm:$0xff]  }
  0x27   :  { %49 = vst.msk [vmem:[#allocation2] sm:$0xff] %vm48_vm0, %v275_v0  ;;  %50 = vst.msk [vmem:[#allocation2 + $0x8] sm:$0xff] %vm48_vm0, %v275_v0  ;;  %181 = vmatprep.subr.bf16.mxu0 %v275_v0  ;;  %185 = vmatprep.mubr.msk.bf16.mxu0 %vm276_vm1, %v275_v0  ;;  %v197_v2 = vld [vmem:[#allocation6 + $0x8] sm:$0xff]   ;;  %v198_v3 = vld [vmem:[#allocation3] sm:$0xff]   ;;  %vm76_vm2 = vcmask 261120   ;;  %vm148_vm3 = vcmask 781312  }
  0x28   :  { %182 = vmatpush3.bf16.msra.mxu0 %v196_v1  ;;  %v173_v12 = vld [vmem:[%s352_s2] ss:$0 sm:$0xff]  ;;  %s277_s11 = smov [#allocation8]  }
  0x29   :  { %183 = vmatprep.subr.bf16.mxu0 %v275_v0  ;;  %s156_s12 = sshll.u32 %s277_s11, 4  ;;  %s157_s12 = int_to_ptr.vmem [resolvable:$true] %s156_s12 }
  0x2a   :  { %s243_s13 = scalar_lea.vmem %s157_s12, 128  ;;  %p248_p3 = scmp.lt.s32.totalorder %s157_s12, %s157_s12 }
  0x2b   :  { %p244_p2 = scmp.ne.s32.totalorder %s157_s12, %s243_s13  ;;  %p249_p4 = scmp.lt.s32.totalorder %s243_s13, %s243_s13 }
  0x2c   :  { %184 = vmatpush3.bf16.msra.mxu0 %v197_v2 }
  0x2d   :  { %p250_p5 = por %p249_p4, %p248_p3 }
  0x2e   :  { %v51_v4 = vld [vmem:[#allocation2] sm:$0xff]  ;;  %v52_v6 = vld [vmem:[#allocation2 + $0x8] sm:$0xff] }
  0x2f   :  { %186 = vmatmul.mubr.msk.bf16.vlgmr.msra.gmra.mrb[0].mxu0 %vm76_vm2, %v198_v3  ;;  %p251_p6 = pnand %p250_p5, %p244_p2 }
 0x102   :  { %v114_v5 = vpop.f32.mrb[0].mxu0 }
 0x103   :  { %v121_v7 = vadd.f32 %v114_v5, %v51_v4  ;;  %v187_v8 = vpop.f32.mrb[1].mxu0 }
 0x104   :  { %v117_v9 = vpop.f32.mrb[2].mxu0 }
 0x105   :  { %124 = vst.msk [vmem:[#allocation2] sm:$0xff] %vm48_vm0, %v121_v7  ;;  %v122_v10 = vadd.f32 %v117_v9, %v52_v6  ;;  %v188_v11 = vpop.f32.mrb[3].mxu0 }
 0x107   :  { %125 = vst.msk [vmem:[#allocation2 + $0x8] sm:$0xff] %vm48_vm0, %v122_v10 }
 0x10c   :  { %v129_v13 = vld [vmem:[#allocation2] sm:$0xff] }
 0x10d   :  { %v138_v14 = vadd.f32 %v173_v12, %v129_v13 }
 0x10e   :  { %v130_v15 = vld [vmem:[#allocation2 + $0x8] sm:$0xff] }
 0x10f   :  { %v139_v16 = vadd.f32 %v173_v12, %v130_v15  ;;  %v176_v17 = vpack.c.bf16 %v138_v14, %v138_v14 }
 0x111   :  { %v177_v18 = vpack.c.bf16 %v139_v16, %v139_v16  ;;  %149 = vst.msk [vmem:[#allocation8] sm:$0xf] %vm148_vm3, %v176_v17 }
 0x113   :  { %150 = vst.msk [vmem:[#allocation8 + $0x4] sm:$0xf] %vm148_vm3, %v177_v18 }
 0x114   :  { %254 = shalt.err (!%p251_p6)
}
 0x115   :  { %s255_s15 = scalar_lea.hbm %s353_s3, 128 }
 0x116   :  { %p256_p7 = scmp.ne.s32.totalorder %s353_s3, %s255_s15  ;;  %p259_p8 = scmp.lt.u32.totalorder %s255_s15, %s353_s3 }
 0x118   :  { %p261_p9 = pnand %p259_p8, %p256_p7 }
 0x11a   :  { %264 = shalt.err (!%p261_p9)
}
 0x11b   :  { %162 = dma.vmem_to_hbm [thread:$0]  %s157_s12, 128, %s353_s3, [#allocation5], %s272_s22, %s272_s22, %s273_s23  }
 0x11c   :  { %269 = dma.done.wait [#allocation5], 128  }
 0x11d   :  { %270 = vsyncadd [#allocation5], 4294967168 }
 0x11e   :  { %166 = vsyncpa [#allocation4], 1 }
 0x11f   :  { %167 = vsyncpa [#allocation7], 1 }
 0x120   :  { %168 = vsyncpa [#allocation5], 1 }

</bundles_post_ra>
